<compile_context>
chip_gen: v7x
topology: tpu7x:2x2x1
jax: 0.10.0
libtpu: 0.0.40
codegen_flags: <defaults>
</compile_context>

<pallas_src>
import math

import jax
import jax.numpy as jnp
from jax.experimental import pallas as pl
from jax.experimental.pallas import tpu as pltpu


_LANE_CANDIDATES = (32768, 16384, 8192, 4096, 2048, 1024, 512, 256, 128)
_SINGLE_BLOCK_BYTES = 4 * 1024 * 1024    # slabs up to this copy in one block
_TARGET_BLOCK_BYTES = 2 * 1024 * 1024    # row-tile size for large slabs


def _copy_kernel(x_ref, o_ref):
    # Pure data movement: one full-width VMEM tile in, same tile out.
    o_ref[...] = x_ref[...]


def _pick_slab(total):
    """Choose a lane-dense 2-D slab (rows, lanes, padded_total) for `total` elems."""
    for lanes in _LANE_CANDIDATES:
        if total % lanes == 0:
            return total // lanes, lanes, total
    # Rare fallback (total not a multiple of 128): pad the flat length up to
    # the next multiple of 128 so the last dim stays lane-dense.
    lanes = 128
    padded = pl.cdiv(total, lanes) * lanes
    return padded // lanes, lanes, padded


def _pick_block_rows(rows, lanes, itemsize):
    """Rows per block: ~_TARGET_BLOCK_BYTES, multiple of 8, prefer an exact divisor."""
    max_rows = max(8, (_TARGET_BLOCK_BYTES // (lanes * itemsize)) // 8 * 8)
    if rows <= max_rows:
        return rows
    for cand in range(max_rows, 7, -8):       # largest multiple-of-8 divisor of rows
        if rows % cand == 0:
            return cand
    return max_rows                           # non-divisible: boundary block is masked


def _lane_dense_copy(x2d):
    rows, lanes = x2d.shape
    itemsize = jnp.dtype(x2d.dtype).itemsize

    if rows * lanes * itemsize <= _SINGLE_BLOCK_BYTES:
        # Whole slab in one block: no grid, no per-step launch overhead.
        return pl.pallas_call(
            _copy_kernel,
            out_shape=jax.ShapeDtypeStruct((rows, lanes), x2d.dtype),
        )(x2d)

    block_rows = _pick_block_rows(rows, lanes, itemsize)
    grid = (pl.cdiv(rows, block_rows),)
    return pl.pallas_call(
        _copy_kernel,
        out_shape=jax.ShapeDtypeStruct((rows, lanes), x2d.dtype),
        grid=grid,
        in_specs=[pl.BlockSpec((block_rows, lanes), lambda i: (i, 0))],
        out_specs=pl.BlockSpec((block_rows, lanes), lambda i: (i, 0)),
        compiler_params=pltpu.CompilerParams(
            dimension_semantics=("parallel",),
        ),
    )(x2d)


def same_forward(x):
    """Pallas implementation of `Same.forward` (x.squeeze(0)); works for any rank."""
    if x.ndim == 0 or x.shape[0] != 1:
        # torch.squeeze(0) with size != 1 is the identity (a view): no data
        # movement at all, so don't launch a copy kernel.
        return x

    out_shape = x.shape[1:]
    total = math.prod(x.shape)
    if total == 0:
        return jnp.reshape(x, out_shape)

    rows, lanes, padded = _pick_slab(total)

    flat = jnp.reshape(x, (total,))           # free: contiguous metadata change
    if padded != total:
        # TODO(synk): non-128-divisible element counts pay one extra pad copy here.
        flat = jnp.pad(flat, (0, padded - total))
    x2d = jnp.reshape(flat, (rows, lanes))

    y2d = _lane_dense_copy(x2d)

    y_flat = jnp.reshape(y2d, (padded,))
    if padded != total:
        y_flat = y_flat[:total]
    return jnp.reshape(y_flat, out_shape)


if __name__ == "__main__":
    key = jax.random.PRNGKey(0)

    # Case 1: leading dim of size 1 -> squeezed away (the intended use).
    x1 = jax.random.normal(key, (1, 4, 16, 16), dtype=jnp.float32)
    y1 = jax.block_until_ready(same_forward(x1))
    assert y1.shape == (4, 16, 16)
    assert jnp.array_equal(y1, x1[0])

    # Case 2: leading dim != 1 -> squeeze(0) is a no-op (PyTorch semantics).
    x2 = jax.random.normal(jax.random.PRNGKey(1), (2, 4, 16, 16), dtype=jnp.float32)
    y2 = jax.block_until_ready(same_forward(x2))
    assert y2.shape == (2, 4, 16, 16)
    assert jnp.array_equal(y2, x2)

    # Case 3: larger input to exercise the tiled multi-block copy path
    # (6 MiB -> (16, 32768) f32 blocks over a 3-step "parallel" grid).
    x3 = jax.random.normal(jax.random.PRNGKey(2), (1, 48, 128, 256), dtype=jnp.float32)
    y3 = jax.block_until_ready(same_forward(x3))
    assert y3.shape == (48, 128, 256)
    assert jnp.array_equal(y3, x3[0])

    print("KERNEL_OK")
</pallas_src>

<mosaic_0001>
module attributes {stable_mosaic.version = 11 : i64} {
  func.func @_copy_kernel(%arg0: memref<1x1024xf32, #tpu.memory_space<vmem>>, %arg1: memref<1x1024xf32, #tpu.memory_space<vmem>>) attributes {dimension_semantics = [], scalar_prefetch = 0 : i64, scratch_operands = 0 : i64, tpu.core_type = #tpu.core_type<tc>} {
    %c0 = arith.constant 0 : index
    %c0_0 = arith.constant 0 : index
    %0 = vector.load %arg0[%c0, %c0_0] : memref<1x1024xf32, #tpu.memory_space<vmem>>, vector<1x1024xf32>
    %c0_1 = arith.constant 0 : index
    %c0_2 = arith.constant 0 : index
    %1 = vector.load %arg1[%c0_1, %c0_2] : memref<1x1024xf32, #tpu.memory_space<vmem>>, vector<1x1024xf32>
    tpu.vector_store %arg1[%c0_1, %c0_2], %0 {strides = array<i32>} : memref<1x1024xf32, #tpu.memory_space<vmem>>, vector<1x1024xf32>,
    return
  }
}

</mosaic_0001>

<bundles_post_ra>
// kernel: tpu_custom_call.1
= control target key start
LH: loop header
LB: loop body
LE: loop exit
PB: predicated region body
PF: predicated region fallthrough
CT: control target
= control target key end

     0   :  { %6 = vsyncpa [#allocation3], 0  ;;  %s124_s0 = inlined_call_operand.hbm [shape: f32[1,1024], index: 0, kind: input, shape index: {}]   ;;  %s125_s1 = inlined_call_operand.hbm [shape: f32[1,1024], index: 1, kind: output, shape index: {}]  }
   0x1   :  { %7 = vsyncpa [#allocation4], 0  ;;  %s88_s6 = smov [#allocation2]   ;;  %s40_s10 = scalar_lea.hbm %s124_s0, 128 }
   0x2   :  { %s14_s7 = sshll.u32 %s88_s6, 4  ;;  %p41_p0 = scmp.ne.s32.totalorder %s124_s0, %s40_s10  ;;  %s15_s7 = int_to_ptr.vmem [resolvable:$true] %s14_s7 }
   0x3   :  { %p44_p1 = scmp.lt.u32.totalorder %s40_s10, %s124_s0 }
   0x5   :  { %p46_p2 = pnand %p44_p1, %p41_p0 }
   0x7   :  { %49 = shalt.err (!%p46_p2)
}
   0x8   :  { %s50_s15 = scalar_lea.vmem %s15_s7, 128  ;;  %p55_p4 = scmp.lt.s32.totalorder %s15_s7, %s15_s7 }
   0x9   :  { %p51_p3 = scmp.ne.s32.totalorder %s15_s7, %s50_s15  ;;  %p56_p5 = scmp.lt.s32.totalorder %s50_s15, %s50_s15 }
   0xb   :  { %p57_p6 = por %p56_p5, %p55_p4 }
   0xd   :  { %p58_p7 = pnand %p57_p6, %p51_p3 }
   0xf   :  { %61 = shalt.err (!%p58_p7)
}
  0x10   :  { %17 = dma.hbm_to_vmem [thread:$0]  %s124_s0, 128, %s15_s7, [#allocation3]  }
  0x11   :  { %84 = dma.done.wait [#allocation3], 128  }
  0x12   :  { %85 = vsyncadd [#allocation3], 4294967168  ;;  %s89_s18 = smov [#allocation5]   ;;  %v21_v0 = vld [vmem:[#allocation2] sm:$0xff] }
  0x13   :  { %s29_s19 = sshll.u32 %s89_s18, 4  ;;  %22 = vst [vmem:[#allocation5] sm:$0xff] %v21_v0  ;;  %s30_s19 = int_to_ptr.vmem [resolvable:$true] %s29_s19 }
  0x14   :  { %s62_s20 = scalar_lea.vmem %s30_s19, 128  ;;  %p67_p9 = scmp.lt.s32.totalorder %s30_s19, %s30_s19 }
  0x15   :  { %p63_p8 = scmp.ne.s32.totalorder %s30_s19, %s62_s20  ;;  %p68_p10 = scmp.lt.s32.totalorder %s62_s20, %s62_s20 }
  0x17   :  { %p69_p11 = por %p68_p10, %p67_p9 }
  0x19   :  { %p70_p12 = pnand %p69_p11, %p63_p8 }
  0x1b   :  { %73 = shalt.err (!%p70_p12)
}
  0x1c   :  { %s74_s23 = scalar_lea.hbm %s125_s1, 128 }
  0x1d   :  { %p75_p13 = scmp.ne.s32.totalorder %s125_s1, %s74_s23  ;;  %p78_p0 = scmp.lt.u32.totalorder %s74_s23, %s125_s1 }
  0x1f   :  { %p80_p1 = pnand %p78_p0, %p75_p13 }
  0x21   :  { %83 = shalt.err (!%p80_p1)
}
  0x22   :  { %32 = dma.vmem_to_hbm [thread:$0]  %s30_s19, 128, %s125_s1, [#allocation4]  }
  0x23   :  { %86 = dma.done.wait [#allocation4], 128  }
  0x24   :  { %87 = vsyncadd [#allocation4], 4294967168 }
  0x25   :  { %36 = vsyncpa [#allocation3], 1 }
  0x26   :  { %37 = vsyncpa [#allocation4], 1 }

</bundles_post_ra>
